<compile_context>
chip_gen: v7x
topology: tpu7x:2x2x1
jax: 0.10.0
libtpu: 0.0.40
codegen_flags: <defaults>
</compile_context>

<pallas_src>
import jax
import jax.numpy as jnp
from jax.experimental import pallas as pl
from jax.experimental.pallas import tpu as pltpu

_LANE = 128
_MAX_COLS = 2048                 # wide, lane-dense tiles (unmasked vst)
_TARGET_TILE_BYTES = 4 << 20     # ~4 MiB/block: amortizes ~0.35us/step overhead
_VMEM_LIMIT_BYTES = 32 << 20     # 4 pipeline buffers x 4 MiB = 16 MiB + headroom


def _identity_kernel(x_ref, o_ref):
    # Hot path: straight VMEM tile copy.
    o_ref[...] = x_ref[...]


def _sublane_pack(itemsize: int) -> int:
    """Native sublane packing: 8 for 4-byte, 16 for 2-byte, 32 for 1-byte."""
    return max(8, 32 // itemsize)


def _pick_cols(n: int):
    """Largest multiple-of-128 divisor of n, capped at _MAX_COLS (else None)."""
    if n % _LANE != 0:
        return None
    m = n // _LANE
    for d in range(min(_MAX_COLS // _LANE, m), 0, -1):
        if m % d == 0:
            return d * _LANE
    return _LANE


_GRID_SEMANTICS = None


def _grid_semantics():
    """Probe once whether CORE_PARALLEL is accepted (v7x: shards grid across
    both TensorCores, ~2x HBM BW for this mem-bound copy); fall back to
    "parallel" otherwise."""
    global _GRID_SEMANTICS
    if _GRID_SEMANTICS is not None:
        return _GRID_SEMANTICS
    try:
        probe = jnp.arange(24 * 256, dtype=jnp.float32).reshape(24, 256)
        out = pl.pallas_call(
            _identity_kernel,
            out_shape=jax.ShapeDtypeStruct((24, 256), jnp.float32),
            grid=(3,),  # odd grid: checks uneven core splits too
            in_specs=[pl.BlockSpec((8, 256), lambda i: (i, 0))],
            out_specs=pl.BlockSpec((8, 256), lambda i: (i, 0)),
            compiler_params=pltpu.CompilerParams(
                dimension_semantics=(pltpu.CORE_PARALLEL,)),
        )(probe)
        jax.block_until_ready(out)
        if not bool(jnp.array_equal(out, probe)):
            raise ValueError("core-parallel probe mismatch")
        _GRID_SEMANTICS = (pltpu.CORE_PARALLEL,)
    except Exception:
        _GRID_SEMANTICS = ("parallel",)
    return _GRID_SEMANTICS


def _tiled_copy(x2d: jax.Array, block, grid, index_map, cost) -> jax.Array:
    semantics = _grid_semantics() if grid[0] > 1 else ("arbitrary",)
    return pl.pallas_call(
        _identity_kernel,
        out_shape=jax.ShapeDtypeStruct(x2d.shape, x2d.dtype),
        grid=grid,
        in_specs=[pl.BlockSpec(block, index_map)],
        out_specs=pl.BlockSpec(block, index_map),
        cost_estimate=cost,
        compiler_params=pltpu.CompilerParams(
            dimension_semantics=semantics,
            vmem_limit_bytes=_VMEM_LIMIT_BYTES,
        ),
    )(x2d)


def dummy_layer_forward(x: jax.Array, *, donate: bool = False) -> jax.Array:
    """Pallas implementation of DummyLayer.forward(x) -> x (identity).

    donate=True: the caller promises it no longer needs its handle to x, so we
    return x itself — a true zero-copy identity (0 bytes of HBM traffic).
    An aliased kernel would still stream 2N bytes and can trigger a defensive
    copy if x was not actually donated at the jit boundary.
    """
    if donate:
        return x

    orig_shape = x.shape
    dtype = x.dtype
    n = 1
    for d in orig_shape:
        n *= d
    if n == 0:
        return x

    itemsize = jnp.dtype(dtype).itemsize
    cost = pl.CostEstimate(flops=0, transcendentals=0,
                           bytes_accessed=2 * n * itemsize)

    cols = _pick_cols(n)
    if cols is not None:
        # Fast path: lane-dense (rows, cols) slab, row-tiled pipeline.
        rows = n // cols
        x2d = x.reshape(rows, cols)          # metadata-only reshape
        sub = _sublane_pack(itemsize)
        tile_r = max(sub, _TARGET_TILE_BYTES // (cols * itemsize))
        tile_r = (tile_r // sub) * sub       # sublane-packing aligned
        if tile_r >= rows:
            tile_r = rows                    # full-extent rows: always legal
            grid = (1,)
        else:
            grid = (pl.cdiv(rows, tile_r),)  # ragged last block masked by Pallas
        out2d = _tiled_copy(x2d, (tile_r, cols), grid, lambda i: (i, 0), cost)
        return out2d.reshape(orig_shape)

    # Ragged element count (n % 128 != 0): column-tiled streaming copy.
    # Recover sublane density when possible (8 rows), else a single flat row.
    if n % 8 == 0:
        rows, c_total = 8, n // 8
    else:
        rows, c_total = 1, n
    x2d = x.reshape(rows, c_total)           # metadata-only reshape
    tile_c = max(_LANE, _TARGET_TILE_BYTES // (rows * itemsize))
    tile_c = (tile_c // _LANE) * _LANE       # lane-dense column tiles
    if tile_c >= c_total:
        tile_c = c_total                     # full-extent cols: always legal
        grid = (1,)
    else:
        grid = (pl.cdiv(c_total, tile_c),)   # ragged last block masked by Pallas
    out2d = _tiled_copy(x2d, (rows, tile_c), grid, lambda i: (0, i), cost)
    return out2d.reshape(orig_shape)


if __name__ == "__main__":
    key = jax.random.PRNGKey(0)
    # Small NCHW input consistent with a generic layer: batch=2, C=4, H=W=16.
    x = jax.random.normal(key, (2, 4, 16, 16), dtype=jnp.float32)

    y = jax.block_until_ready(dummy_layer_forward(x))
    assert y.shape == x.shape and y.dtype == x.dtype
    assert bool(jnp.array_equal(y, x))

    # True zero-copy donate path.
    assert dummy_layer_forward(x, donate=True) is x

    # Exercise: multi-tile pipelined path, single-block path, bf16 packing,
    # ragged-but-8-aligned path, and fully ragged path.
    cases = [
        ((8, 16, 128, 128), jnp.float32),   # rows=1024 -> grid=(2,), pipelined
        ((16, 16, 64, 64), jnp.float32),    # single ~4 MiB block
        ((4, 8, 64, 64), jnp.bfloat16),     # bf16: sublane packing of 16
        ((2, 3, 5, 8), jnp.float32),        # n%128!=0, n%8==0 -> (8, n//8)
        ((2, 3, 5, 5), jnp.float32),        # fully ragged -> (1, n)
    ]
    for shape, dt in cases:
        xi = jax.random.normal(jax.random.PRNGKey(1), shape, dtype=dt)
        yi = jax.block_until_ready(dummy_layer_forward(xi))
        assert yi.shape == xi.shape and yi.dtype == xi.dtype
        assert bool(jnp.array_equal(yi, xi))

    print("KERNEL_OK")
</pallas_src>

<mosaic_0001>
module attributes {stable_mosaic.version = 11 : i64} {
  func.func @_identity_kernel(%arg0: i32, %arg1: memref<1x2048xf32, #tpu.memory_space<vmem>>, %arg2: memref<1x2048xf32, #tpu.memory_space<vmem>>) attributes {dimension_semantics = [#tpu.dimension_semantics<arbitrary>], iteration_bounds = array<i64: 1>, scalar_prefetch = 0 : i64, scratch_operands = 0 : i64, tpu.core_type = #tpu.core_type<tc>, window_params = [{transform_indices = @transform_0, window_bounds = array<i64: 1, 2048>}, {transform_indices = @transform_1, window_bounds = array<i64: 1, 2048>}]} {
    %c0 = arith.constant 0 : index
    %c0_0 = arith.constant 0 : index
    %0 = vector.load %arg1[%c0, %c0_0] : memref<1x2048xf32, #tpu.memory_space<vmem>>, vector<1x2048xf32>
    %c0_1 = arith.constant 0 : index
    %c0_2 = arith.constant 0 : index
    %1 = vector.load %arg2[%c0_1, %c0_2] : memref<1x2048xf32, #tpu.memory_space<vmem>>, vector<1x2048xf32>
    tpu.vector_store %arg2[%c0_1, %c0_2], %0 {strides = array<i32>} : memref<1x2048xf32, #tpu.memory_space<vmem>>, vector<1x2048xf32>,
    return
  }
  func.func @transform_0(%arg0: i32) -> (i32, i32) {
    %c0_i32 = arith.constant 0 : i32
    %c0_i32_0 = arith.constant 0 : i32
    return %arg0, %c0_i32 : i32, i32
  }
  func.func @transform_1(%arg0: i32) -> (i32, i32) {
    %c0_i32 = arith.constant 0 : i32
    %c0_i32_0 = arith.constant 0 : i32
    return %arg0, %c0_i32 : i32, i32
  }
}

</mosaic_0001>

<bundles_post_ra>
// kernel: tpu_custom_call.1
= control target key start
LH: loop header
LB: loop body
LE: loop exit
PB: predicated region body
PF: predicated region fallthrough
CT: control target
= control target key end

     0   :  { %6 = vsyncpa [#allocation3], 0  ;;  %s126_s0 = inlined_call_operand.hbm [shape: f32[1,2048], index: 0, kind: input, shape index: {}]   ;;  %s127_s1 = inlined_call_operand.hbm [shape: f32[1,2048], index: 1, kind: output, shape index: {}]  }
   0x1   :  { %7 = vsyncpa [#allocation4], 0  ;;  %s90_s6 = smov [#allocation2]   ;;  %s42_s10 = scalar_lea.hbm %s126_s0, 256 }
   0x2   :  { %s14_s7 = sshll.u32 %s90_s6, 4  ;;  %p43_p0 = scmp.ne.s32.totalorder %s126_s0, %s42_s10  ;;  %s15_s7 = int_to_ptr.vmem [resolvable:$true] %s14_s7 }
   0x3   :  { %p46_p1 = scmp.lt.u32.totalorder %s42_s10, %s126_s0 }
   0x5   :  { %p48_p2 = pnand %p46_p1, %p43_p0 }
   0x7   :  { %51 = shalt.err (!%p48_p2)
}
   0x8   :  { %s52_s15 = scalar_lea.vmem %s15_s7, 256  ;;  %p57_p4 = scmp.lt.s32.totalorder %s15_s7, %s15_s7 }
   0x9   :  { %p53_p3 = scmp.ne.s32.totalorder %s15_s7, %s52_s15  ;;  %p58_p5 = scmp.lt.s32.totalorder %s52_s15, %s52_s15 }
   0xb   :  { %p59_p6 = por %p58_p5, %p57_p4 }
   0xd   :  { %p60_p7 = pnand %p59_p6, %p53_p3 }
   0xf   :  { %63 = shalt.err (!%p60_p7)
}
  0x10   :  { %17 = dma.hbm_to_vmem [thread:$0]  %s126_s0, 256, %s15_s7, [#allocation3]  }
  0x11   :  { %86 = dma.done.wait [#allocation3], 256  }
  0x12   :  { %87 = vsyncadd [#allocation3], 4294967040  ;;  %s91_s18 = smov [#allocation5]   ;;  %v21_v0 = vld [vmem:[#allocation2] sm:$0xff]  ;;  %v22_v1 = vld [vmem:[#allocation2 + $0x8] sm:$0xff] }
  0x13   :  { %s31_s19 = sshll.u32 %s91_s18, 4  ;;  %23 = vst [vmem:[#allocation5] sm:$0xff] %v21_v0  ;;  %24 = vst [vmem:[#allocation5 + $0x8] sm:$0xff] %v22_v1  ;;  %s32_s19 = int_to_ptr.vmem [resolvable:$true] %s31_s19 }
  0x14   :  { %s64_s20 = scalar_lea.vmem %s32_s19, 256  ;;  %p69_p9 = scmp.lt.s32.totalorder %s32_s19, %s32_s19 }
  0x15   :  { %p65_p8 = scmp.ne.s32.totalorder %s32_s19, %s64_s20  ;;  %p70_p10 = scmp.lt.s32.totalorder %s64_s20, %s64_s20 }
  0x17   :  { %p71_p11 = por %p70_p10, %p69_p9 }
  0x19   :  { %p72_p12 = pnand %p71_p11, %p65_p8 }
  0x1b   :  { %75 = shalt.err (!%p72_p12)
}
  0x1c   :  { %s76_s0 = scalar_lea.hbm %s127_s1, 256 }
  0x1d   :  { %p77_p13 = scmp.ne.s32.totalorder %s127_s1, %s76_s0  ;;  %p80_p0 = scmp.lt.u32.totalorder %s76_s0, %s127_s1 }
  0x1f   :  { %p82_p1 = pnand %p80_p0, %p77_p13 }
  0x21   :  { %85 = shalt.err (!%p82_p1)
}
  0x22   :  { %34 = dma.vmem_to_hbm [thread:$0]  %s32_s19, 256, %s127_s1, [#allocation4]  }
  0x23   :  { %88 = dma.done.wait [#allocation4], 256  }
  0x24   :  { %89 = vsyncadd [#allocation4], 4294967040 }
  0x25   :  { %38 = vsyncpa [#allocation3], 1 }
  0x26   :  { %39 = vsyncpa [#allocation4], 1 }

</bundles_post_ra>
